<compile_context>
chip_gen: v6e
topology: v6e:2x2x1
jax: 0.10.0
libtpu: 0.0.40
codegen_flags: <defaults>
</compile_context>

<pallas_src>
import functools

import jax
import jax.numpy as jnp
from jax.experimental import pallas as pl
from jax.experimental.pallas import tpu as pltpu

# ----- model hyper-parameters (small, consistent with the module) -------------
BATCH = 2          # B
LOOK_BACK = 8      # T  (params['look_back'] == sequence length)
FEATURES = 4       # F  (len(params['feature_cols']) == conv channels)
PREDICT_STEPS = 3  # P  (params['predict_steps'])

LANE = 128         # TPU lane width: even/odd conv halves are tile-aligned


# ------------------------------- Pallas kernel --------------------------------
def cnn_m2m_kernel(x_ref, w_conv_ref, fc_w_ref, out_ref):
    """Depthwise Conv1d + ReLU + MaxPool1d(2) + Linear, all VMEM-resident.

    x_ref      : (B, K)        time-flattened input (lane = f*T + t), plus a
                               constant-1 column (bias lane), zero-padded to K
    w_conv_ref : (K, 2*LANE)   [even-position conv | odd-position conv] matrix,
                               conv bias folded into the row matching the
                               constant-1 column; halves tile-aligned at LANE
    fc_w_ref   : (LANE, P)     fc1 weight (pre-transposed, zero-padded); the
                               fc bias sits in the row matching the constant-1
                               pooled lane
    out_ref    : (B, P)        output
    """
    # Conv1d(k=3, pad=1, groups=F) at even/odd time positions + bias, one MXU
    # matmul, f32 accumulation, then ReLU.
    y = jnp.maximum(
        jnp.dot(x_ref[...], w_conv_ref[...], preferred_element_type=jnp.float32),
        0.0)                                                   # (B, 2*LANE)

    # MaxPool1d(kernel_size=2): max over each (even, odd) pair. The halves are
    # aligned to 128-lane tiles, so the split is a free vreg selection.
    half = y.shape[-1] // 2
    pooled = jnp.maximum(y[:, :half], y[:, half:])             # (B, LANE)

    # Dropout (eval) = identity. Final Linear (bias folded into fc_w).
    out_ref[...] = jnp.dot(pooled, fc_w_ref[...],
                           preferred_element_type=jnp.float32)  # (B, P)


# ------------------------------- wrapper ---------------------------------------
@functools.partial(jax.jit)
def cnn_many_to_many(x, conv_w, conv_b, fc_w, fc_b):
    """x: (B, T, F) batch-first like PyTorch. Returns (B, P) float32.

    conv_w : (F, 1, 3)   nn.Conv1d(F, F, 3, padding=1, groups=F) weight
    conv_b : (F,)        conv bias
    fc_w   : (P, F*T//2) nn.Linear weight
    fc_b   : (P,)        nn.Linear bias
    """
    B, T, F = x.shape
    P = fc_b.shape[-1]
    T2 = T // 2
    FT, FT2 = F * T, F * T2
    dtype = jnp.float32

    # ---- layout plumbing, all hoisted out of the kernel -----------------------
    # Time-flattened input (lane = f*T + t), a constant-1 bias column at index
    # FT, and zero padding of the contraction dim up to a multiple of 8.
    K = ((FT + 1 + 7) // 8) * 8
    x_flat = jnp.transpose(x, (0, 2, 1)).reshape(B, FT).astype(dtype)
    x_aug = jnp.zeros((B, K), dtype)
    x_aug = x_aug.at[:, :FT].set(x_flat)
    x_aug = x_aug.at[:, FT].set(1.0)

    # Depthwise conv as a block-diagonal matrix, restricted to even / odd output
    # positions.  Contribution of input sample s to output position p uses conv
    # tap j = s - p + 1 (valid when 0 <= j <= 2); zero padding at the ends falls
    # out automatically.
    w = conv_w.reshape(F, 3).astype(dtype)
    s_idx = jnp.arange(T)[:, None]                  # input position within channel
    t2_idx = jnp.arange(T2)[None, :]                # pooled output index

    def conv_block(k_idx):                          # (F, T, T2) per-channel taps
        valid = ((k_idx >= 0) & (k_idx <= 2)).astype(dtype)
        return w[:, jnp.clip(k_idx, 0, 2)] * valid[None]

    blk_even = conv_block(s_idx - 2 * t2_idx + 1)   # output position p = 2*t2
    blk_odd = conv_block(s_idx - 2 * t2_idx)        # output position p = 2*t2 + 1

    eye_f = jnp.eye(F, dtype=dtype)                 # block-diagonalize per channel
    w_even = jnp.einsum('fg,fst->fsgt', eye_f, blk_even).reshape(FT, FT2)
    w_odd = jnp.einsum('fg,fst->fsgt', eye_f, blk_odd).reshape(FT, FT2)
    b_row = jnp.repeat(conv_b.astype(dtype), T2)    # conv bias per pooled lane

    # Combined conv matrix: even block in lanes [0, FT2), odd block in lanes
    # [LANE, LANE+FT2); bias folded into the constant-1 row; lane FT2 of the
    # even half carries a constant 1 so the fc bias can ride the second matmul
    # (relu(1)=1, max(1,0)=1).
    w_conv = jnp.zeros((K, 2 * LANE), dtype)
    w_conv = w_conv.at[:FT, :FT2].set(w_even)
    w_conv = w_conv.at[FT, :FT2].set(b_row)
    w_conv = w_conv.at[:FT, LANE:LANE + FT2].set(w_odd)
    w_conv = w_conv.at[FT, LANE:LANE + FT2].set(b_row)
    w_conv = w_conv.at[FT, FT2].set(1.0)

    # fc1 weight pre-transposed and zero-padded; fc bias in the constant-1 row.
    fc_w_pad = jnp.zeros((LANE, P), dtype)
    fc_w_pad = fc_w_pad.at[:FT2, :].set(fc_w.astype(dtype).T)
    fc_w_pad = fc_w_pad.at[FT2, :].set(fc_b.astype(dtype))

    # Single invocation, no grid: total footprint is a few KiB, fully in VMEM.
    return pl.pallas_call(
        cnn_m2m_kernel,
        out_shape=jax.ShapeDtypeStruct((B, P), dtype),
        in_specs=[pl.BlockSpec(memory_space=pltpu.MemorySpace.VMEM)] * 3,
        out_specs=pl.BlockSpec(memory_space=pltpu.MemorySpace.VMEM),
    )(x_aug, w_conv, fc_w_pad)


# ------------------------------- pure-JAX reference ----------------------------
def reference(x, conv_w, conv_b, fc_w, fc_b):
    B, T, F = x.shape
    T2 = T // 2
    xc = jnp.transpose(x, (0, 2, 1))                       # (B, F, T)
    xp = jnp.pad(xc, ((0, 0), (0, 0), (1, 1)))             # zero padding=1
    w = conv_w.reshape(F, 3)
    y = (w[:, 0][None, :, None] * xp[:, :, 0:T]
         + w[:, 1][None, :, None] * xp[:, :, 1:T + 1]
         + w[:, 2][None, :, None] * xp[:, :, 2:T + 2]
         + conv_b[None, :, None])                          # depthwise conv
    y = jnp.maximum(y, 0.0)                                # ReLU
    z = y.reshape(B, F, T2, 2).max(axis=-1)                # MaxPool1d(2)
    flat = z.reshape(B, F * T2)                            # (B, F*T2), idx f*T2+t2
    return (jnp.dot(flat, fc_w.T, precision=jax.lax.Precision.HIGHEST)
            + fc_b[None, :])


# ------------------------------- main -------------------------------------------
if __name__ == "__main__":
    key = jax.random.PRNGKey(0)
    ks = jax.random.split(key, 5)
    B, T, F, P = BATCH, LOOK_BACK, FEATURES, PREDICT_STEPS

    # Deterministic "synthetic checkpoint" (shapes match nn.Conv1d / nn.Linear).
    x = jax.random.normal(ks[0], (B, T, F), jnp.float32)
    k_conv = 1.0 / jnp.sqrt(jnp.float32(3))                # fan_in = 1 * kernel
    conv_w = jax.random.uniform(ks[1], (F, 1, 3), jnp.float32, -k_conv, k_conv)
    conv_b = jax.random.uniform(ks[2], (F,), jnp.float32, -k_conv, k_conv)
    k_fc = 1.0 / jnp.sqrt(jnp.float32(F * (T // 2)))
    fc_w = jax.random.uniform(ks[3], (P, F * (T // 2)), jnp.float32, -k_fc, k_fc)
    fc_b = jax.random.uniform(ks[4], (P,), jnp.float32, -k_fc, k_fc)

    out = cnn_many_to_many(x, conv_w, conv_b, fc_w, fc_b)
    out = jax.block_until_ready(out)

    ref = reference(x, conv_w, conv_b, fc_w, fc_b)
    assert out.shape == (B, P), out.shape
    assert jnp.allclose(out, ref, atol=5e-4, rtol=5e-4), (out, ref)
    print("KERNEL_OK")
</pallas_src>

<mosaic_0001>
module attributes {stable_mosaic.version = 11 : i64} {
  func.func @cnn_m2m_kernel(%arg0: memref<2x40xf32, #tpu.memory_space<vmem>>, %arg1: memref<40x256xf32, #tpu.memory_space<vmem>>, %arg2: memref<128x3xf32, #tpu.memory_space<vmem>>, %arg3: memref<2x3xf32, #tpu.memory_space<vmem>>) attributes {dimension_semantics = [], scalar_prefetch = 0 : i64, scratch_operands = 0 : i64, tpu.core_type = #tpu.core_type<tc>} {
    %c0 = arith.constant 0 : index
    %c0_0 = arith.constant 0 : index
    %0 = vector.load %arg0[%c0, %c0_0] : memref<2x40xf32, #tpu.memory_space<vmem>>, vector<2x40xf32>
    %c0_1 = arith.constant 0 : index
    %c0_2 = arith.constant 0 : index
    %1 = vector.load %arg1[%c0_1, %c0_2] : memref<40x256xf32, #tpu.memory_space<vmem>>, vector<40x256xf32>
    %cst = arith.constant dense<0.000000e+00> : vector<2x256xf32>
    %2 = tpu.matmul %0, %1, %cst {dimension_numbers = #tpu.dot_dimension_numbers<[1], [0], [0], [1], [0, 0, 1, 1], [], []>} : vector<2x40xf32>, vector<40x256xf32>, vector<2x256xf32> -> vector<2x256xf32>
    %cst_3 = arith.constant 0.000000e+00 : f32
    %3 = vector.broadcast %cst_3 : f32 to vector<2x256xf32>
    %4 = arith.maximumf %2, %3 : vector<2x256xf32>
    %5 = vector.extract_strided_slice %4 {offsets = [0, 0], sizes = [2, 128], strides = [1, 1]} : vector<2x256xf32> to vector<2x128xf32>
    %6 = vector.extract_strided_slice %4 {offsets = [0, 128], sizes = [2, 128], strides = [1, 1]} : vector<2x256xf32> to vector<2x128xf32>
    %7 = arith.maximumf %5, %6 : vector<2x128xf32>
    %c0_4 = arith.constant 0 : index
    %c0_5 = arith.constant 0 : index
    %8 = vector.load %arg2[%c0_4, %c0_5] : memref<128x3xf32, #tpu.memory_space<vmem>>, vector<128x3xf32>
    %cst_6 = arith.constant dense<0.000000e+00> : vector<2x3xf32>
    %9 = tpu.matmul %7, %8, %cst_6 {dimension_numbers = #tpu.dot_dimension_numbers<[1], [0], [0], [1], [0, 0, 1, 1], [], []>} : vector<2x128xf32>, vector<128x3xf32>, vector<2x3xf32> -> vector<2x3xf32>
    %c0_7 = arith.constant 0 : index
    %c0_8 = arith.constant 0 : index
    %10 = vector.load %arg3[%c0_7, %c0_8] : memref<2x3xf32, #tpu.memory_space<vmem>>, vector<2x3xf32>
    tpu.vector_store %arg3[%c0_7, %c0_8], %9 {strides = array<i32>} : memref<2x3xf32, #tpu.memory_space<vmem>>, vector<2x3xf32>,
    return
  }
}

</mosaic_0001>

<bundles_post_ra>
// kernel: cnn_many_to_many.1
= control target key start
LH: loop header
LB: loop body
LE: loop exit
PB: predicated region body
PF: predicated region fallthrough
CT: control target
= control target key end

     0   :  { %v284_v4 = vmov 0.0   ;;  %s409_s0 = inlined_call_operand.vmem [shape: f32[2,40], index: 0, kind: input, shape index: {}]   ;;  %s410_s1 = inlined_call_operand.vmem [shape: f32[40,256], index: 1, kind: input, shape index: {}]   ;;  %s411_s2 = inlined_call_operand.vmem [shape: f32[128,3], index: 2, kind: input, shape index: {}]   ;;  %s412_s3 = inlined_call_operand.hbm [shape: f32[2,3], index: 3, kind: output, shape index: {}]  }
   0x1   :  { %v25_v0 = vld [vmem:[%s410_s1 + $0x48] sm:$0xff]  ;;  %v24_v1 = vld [vmem:[%s410_s1 + $0x40] sm:$0xff]  ;;  %v23_v2 = vld [vmem:[%s410_s1 + $0x38] sm:$0xff]  ;;  %94 = vmatprep.mubr.f32.mxu0 %v284_v4  ;;  %224 = vmatprep.subr.mxu1 %v284_v4 }
   0x2   :  { %52 = vmatprep.subr.mxu0 %v25_v0  ;;  %v22_v3 = vld [vmem:[%s410_s1 + $0x30] sm:$0xff]  ;;  %v21_v5 = vld [vmem:[%s410_s1 + $0x28] sm:$0xff]  ;;  %v20_v6 = vld [vmem:[%s410_s1 + $0x20] sm:$0xff] }
   0x3   :  { %53 = vmatpush1.msra.mxu0 %v24_v1  ;;  %v119_v7 = vld [vmem:[%s411_s2 + $0x78] sm:$0xff]  ;;  %v118_v9 = vld [vmem:[%s411_s2 + $0x70] sm:$0xff]  ;;  %v117_v11 = vld [vmem:[%s411_s2 + $0x68] sm:$0xff] }
   0x4   :  { %54 = vmatprep.subr.mxu0 %v23_v2  ;;  %v19_v8 = vld [vmem:[%s410_s1 + $0x18] sm:$0xff]  ;;  %225 = vmatpush3.msra.mxu1 %v119_v7  ;;  %v18_v10 = vld [vmem:[%s410_s1 + $0x10] sm:$0xff]  ;;  %v17_v12 = vld [vmem:[%s410_s1 + $0x8] sm:$0xff] }
   0x5   :  { %55 = vmatpush1.msra.mxu0 %v22_v3  ;;  %226 = vmatprep.subr.mxu1 %v284_v4  ;;  %v16_v13 = vld [vmem:[%s410_s1] sm:$0xff] }
   0x6   :  { %56 = vmatprep.subr.mxu0 %v21_v5  ;;  %227 = vmatpush3.msra.mxu1 %v118_v9  ;;  %v116_v14 = vld [vmem:[%s411_s2 + $0x60] sm:$0xff] }
   0x7   :  { %57 = vmatpush1.msra.mxu0 %v20_v6  ;;  %228 = vmatprep.subr.mxu1 %v284_v4 }
   0x8   :  { %58 = vmatprep.subr.mxu0 %v19_v8 }
   0x9   :  { %8 = vsyncpa [#allocation3], 0  ;;  %59 = vmatpush1.msra.mxu0 %v18_v10  ;;  %v15_v15 = vld [vmem:[%s409_s0] sm:$0x3]  ;;  %vm26_vm0 = vcmask 326656   ;;  %229 = vmatpush3.msra.mxu1 %v117_v11  ;;  %v115_v16 = vld [vmem:[%s411_s2 + $0x58] sm:$0xff] }
   0xa   :  { %60 = vmatprep.subr.mxu0 %v17_v12  ;;  %230 = vmatprep.subr.mxu1 %v284_v4  ;;  %v114_v17 = vld [vmem:[%s411_s2 + $0x50] sm:$0xff]  ;;  %v113_v18 = vld [vmem:[%s411_s2 + $0x48] sm:$0xff]  ;;  %v112_v19 = vld [vmem:[%s411_s2 + $0x40] sm:$0xff]  ;;  %vm285_vm1 = vmmov 0   ;;  %s286_s10 = smov [#allocation2]   ;;  %vm190_vm2 = vcmask 17408  }
   0xb   :  { %61 = vmatpush1.msra.mxu0 %v16_v13  ;;  %231 = vmatpush3.msra.mxu1 %v116_v14  ;;  %v111_v20 = vld [vmem:[%s411_s2 + $0x38] sm:$0xff]  ;;  %v110_v21 = vld [vmem:[%s411_s2 + $0x30] sm:$0xff]  ;;  %v109_v22 = vld [vmem:[%s411_s2 + $0x28] sm:$0xff]  ;;  %s198_s11 = sshll.u32 %s286_s10, 4  ;;  %s199_s11 = int_to_ptr.vmem [resolvable:$true] %s198_s11 }
   0xc   :  { %206 = vmatmul.mubr.msk.f32.vlgmr.msra.gmra.mxu0 %vm26_vm0, %v15_v15  ;;  %232 = vmatprep.subr.mxu1 %v284_v4  ;;  %v108_v23 = vld [vmem:[%s411_s2 + $0x20] sm:$0xff]  ;;  %v107_v24 = vld [vmem:[%s411_s2 + $0x18] sm:$0xff]  ;;  %v106_v25 = vld [vmem:[%s411_s2 + $0x10] sm:$0xff]  ;;  %s262_s12 = scalar_lea.vmem %s199_s11, 32  ;;  %p267_p1 = scmp.lt.s32.totalorder %s199_s11, %s199_s11 }
   0xd   :  { %233 = vmatpush3.msra.mxu1 %v115_v16  ;;  %v105_v26 = vld [vmem:[%s411_s2 + $0x8] sm:$0xff]  ;;  %v104_v27 = vld [vmem:[%s411_s2] sm:$0xff]  ;;  %256 = vmatprep.mubr.msk.f32.mxu1 %vm285_vm1, %v284_v4  ;;  %p263_p0 = scmp.ne.s32.totalorder %s199_s11, %s262_s12  ;;  %p268_p2 = scmp.lt.s32.totalorder %s262_s12, %s262_s12 }
   0xe   :  { %234 = vmatprep.subr.mxu1 %v284_v4 }
   0xf   :  { %235 = vmatpush3.msra.mxu1 %v114_v17  ;;  %p269_p3 = por %p268_p2, %p267_p1 }
  0x10   :  { %236 = vmatprep.subr.mxu1 %v284_v4 }
  0x11   :  { %237 = vmatpush3.msra.mxu1 %v113_v18  ;;  %p270_p4 = pnand %p269_p3, %p263_p0 }
  0x12   :  { %238 = vmatprep.subr.mxu1 %v284_v4 }
  0x13   :  { %239 = vmatpush3.msra.mxu1 %v112_v19 }
  0x14   :  { %240 = vmatprep.subr.mxu1 %v284_v4 }
  0x15   :  { %241 = vmatpush3.msra.mxu1 %v111_v20 }
  0x16   :  { %242 = vmatprep.subr.mxu1 %v284_v4 }
  0x17   :  { %243 = vmatpush3.msra.mxu1 %v110_v21 }
  0x18   :  { %244 = vmatprep.subr.mxu1 %v284_v4 }
  0x19   :  { %245 = vmatpush3.msra.mxu1 %v109_v22 }
  0x1a   :  { %246 = vmatprep.subr.mxu1 %v284_v4 }
  0x1b   :  { %247 = vmatpush3.msra.mxu1 %v108_v23 }
  0x1c   :  { %248 = vmatprep.subr.mxu1 %v284_v4 }
  0x1d   :  { %249 = vmatpush3.msra.mxu1 %v107_v24 }
  0x1e   :  { %250 = vmatprep.subr.mxu1 %v284_v4 }
  0x1f   :  { %251 = vmatpush3.msra.mxu1 %v106_v25 }
  0x20   :  { %252 = vmatprep.subr.mxu1 %v284_v4 }
  0x21   :  { %253 = vmatpush3.msra.mxu1 %v105_v26 }
  0x22   :  { %254 = vmatprep.subr.mxu1 %v284_v4 }
  0x23   :  { %255 = vmatpush3.msra.mxu1 %v104_v27 }
  0xcc   :  { %v96_v28 = vpop.f32.mrf.mxu0 }
  0xcd   :  { %v101_v30 = vmax.f32 %v96_v28, 0.0 }
  0xce   :  { %v98_v29 = vpop.f32.mrf.mxu0 }
  0xcf   :  { %v102_v31 = vmax.f32 %v98_v29, 0.0 }
  0xd1   :  { %v103_v32 = vmax.f32 %v101_v30, %v102_v31 }
  0xd3   :  { %257 = vmatmul.mubr.f32.vlgmr.msra.gmra.mxu1 %v103_v32 }
 0x193   :  { %v186_v33 = vpop.f32.mrf.mxu1 }
 0x194   :  { %191 = vst.msk [vmem:[#allocation2] sm:$0x3] %vm190_vm2, %v186_v33 }
 0x195   :  { %v258_v34 = vpop.f32.mrf.mxu1 }
 0x196   :  { %273 = shalt.err (!%p270_p4)
}
 0x197   :  { %201 = dma.vmem_to_hbm [thread:$0]  %s199_s11, 32, %s412_s3, [#allocation3]  }
 0x198   :  { %282 = dma.done.wait [#allocation3], 32  }
 0x199   :  { %283 = vsyncadd [#allocation3], 4294967264 }
 0x19a   :  { %205 = vsyncpa [#allocation3], 1 }

</bundles_post_ra>
